<compile_context>
chip_gen: v7x
topology: tpu7x:2x2x1
jax: 0.10.0
libtpu: 0.0.40
codegen_flags: <defaults>
</compile_context>

<pallas_src>
import functools

import jax
import jax.numpy as jnp
from jax.experimental import pallas as pl
from jax.experimental.pallas import tpu as pltpu


def _round_up(n, m):
    return ((n + m - 1) // m) * m


# ---------------------------------------------------------------------------
# Kernels
# ---------------------------------------------------------------------------

def _ffn_kernel_fused(x_ref, w1_ref, b1_ref, w2_ref, b2_ref, g_ref, beta_ref,
                      out_ref, *, eps):
    """Un-chunked path: grid = (num_token_tiles,), w1/w2 fully resident, no scratch."""
    cdt = w1_ref.dtype                               # bf16 (or f32) MXU input dtype
    x = x_ref[...]                                   # (tile_m, d_in)
    h = jnp.dot(x.astype(cdt), w1_ref[...], preferred_element_type=jnp.float32)
    h = jnp.maximum(h + b1_ref[...], 0.0)            # bias + ReLU in f32
    y = jnp.dot(h.astype(cdt), w2_ref[...], preferred_element_type=jnp.float32)
    # TODO(synk): dropout is identity (eval-mode forward); training-mode dropout
    # would mask `y` here via pltpu.prng_seed / pltpu.prng_random_bits.
    z = y + b2_ref[...] + x.astype(jnp.float32)      # bias + residual (f32)
    mean = jnp.mean(z, axis=-1, keepdims=True)
    zc = z - mean
    var = jnp.mean(zc * zc, axis=-1, keepdims=True)  # biased variance (LayerNorm)
    inv = jax.lax.rsqrt(var + eps)
    out_ref[...] = (zc * inv * g_ref[...] + beta_ref[...]).astype(out_ref.dtype)


def _ffn_kernel_chunked(x_ref, w1_ref, b1_ref, w2_ref, b2_ref, g_ref, beta_ref,
                        out_ref, acc_ref, *, eps):
    """d_hid-chunked path: grid = (num_token_tiles, hid_chunks), f32 accumulator.

    Residual + b2 are folded into the accumulator init, so the finalize branch
    only performs the LayerNorm.
    """
    k = pl.program_id(1)

    @pl.when(k == 0)
    def _init():
        acc_ref[...] = x_ref[...].astype(jnp.float32) + b2_ref[...]

    cdt = w1_ref.dtype
    h = jnp.dot(x_ref[...].astype(cdt), w1_ref[...],
                preferred_element_type=jnp.float32)
    h = jnp.maximum(h + b1_ref[...], 0.0)            # (tile_m, tile_k)
    acc_ref[...] += jnp.dot(h.astype(cdt), w2_ref[...],
                            preferred_element_type=jnp.float32)

    @pl.when(k == pl.num_programs(1) - 1)
    def _finalize():
        z = acc_ref[...]
        mean = jnp.mean(z, axis=-1, keepdims=True)
        zc = z - mean
        var = jnp.mean(zc * zc, axis=-1, keepdims=True)
        inv = jax.lax.rsqrt(var + eps)
        out_ref[...] = (zc * inv * g_ref[...] + beta_ref[...]).astype(out_ref.dtype)


# ---------------------------------------------------------------------------
# Generation-aware configuration
# ---------------------------------------------------------------------------

def _hw_config():
    """Returns (tile_m_pref, tile_m_chunked_pref, vmem_cap_bytes, cores, lane_k)."""
    kind = ""
    try:
        kind = jax.devices()[0].device_kind.lower()
    except Exception:  # environment probe only; never masks kernel errors
        pass
    is_v5e = ("v5e" in kind) or ("v5 lite" in kind) or ("v5litepod" in kind)
    is_v7 = "v7" in kind
    vmem_cap = None
    try:
        vmem_cap = int(pltpu.get_tpu_info().vmem_capacity_bytes)
    except Exception:  # environment probe only
        pass
    if vmem_cap is None:
        vmem_cap = (64 << 20) if is_v7 else (128 << 20)
    tile_m_pref = 128 if is_v5e else 256      # v5e: 4x128 MXU, single vst slot
    tile_m_chunked = 384 if is_v7 else 512    # amortize weight re-streaming when chunked
    cores = 2 if is_v7 else 1                 # v7x: 2 TensorCores per chip
    lane_k = 128 if is_v5e else 256           # preferred tile_k granularity (MXU depth)
    return tile_m_pref, tile_m_chunked, vmem_cap, cores, lane_k


def _choose_token_tiling(M, tile_pref, cores):
    """Return (tile_m, Mp) with Mp >= M and Mp % tile_m == 0.

    Prefers (a) no wrapper-side pad/slice pass (tile divides M, or a single
    full-extent tile), (b) >= `cores` token tiles so both v7x cores get work.
    """
    if cores > 1 and M > 8:
        per_core = _round_up(max((M + cores - 1) // cores, 8), 8)
        tile_pref = max(8, min(tile_pref, per_core))
    if M <= tile_pref:
        return M, M                              # single full-extent tile, no pad
    if M % 8 == 0:
        t = min(tile_pref, M)
        t -= t % 8
        while t >= 64:
            if M % t == 0:
                return t, M                      # exact tiling, no pad
            t -= 8
    t = max(8, tile_pref - tile_pref % 8)
    return t, _round_up(M, t)                    # pad fallback (one extra HBM pass)


def _estimate_vmem(tile_m, d_in, tile_k, chunks, x_bytes, out_bytes, p_bytes):
    """Rough per-kernel VMEM footprint assuming default double-buffering."""
    pr = lambda r: _round_up(max(r, 1), 8)
    pc = lambda c: _round_up(max(c, 1), 128)
    u = 2 * tile_m * pc(d_in) * x_bytes                  # x tile
    u += 2 * tile_m * pc(d_in) * out_bytes               # out tile
    u += 2 * pr(d_in) * pc(tile_k) * p_bytes             # w1 chunk
    u += 2 * pr(tile_k) * pc(d_in) * p_bytes             # w2 chunk
    u += 2 * pr(1) * pc(tile_k) * 4                      # b1
    u += 3 * 2 * pr(1) * pc(d_in) * 4                    # b2, gamma, beta
    if chunks > 1:
        u += tile_m * pc(d_in) * 4                       # f32 accumulator scratch
    return u


def _auto_hid_chunks(d_in, d_hid, tile_m, x_bytes, out_bytes, p_bytes,
                     vmem_cap, lane_k):
    budget = int(vmem_cap * 0.75)
    if _estimate_vmem(tile_m, d_in, d_hid, 1, x_bytes, out_bytes, p_bytes) <= budget:
        return 1                                          # weights fully resident
    cands = [c for c in range(2, d_hid // 128 + 1)
             if d_hid % c == 0 and (d_hid // c) % 128 == 0]
    good = [c for c in cands if (d_hid // c) % lane_k == 0]
    for c in (good if good else cands):
        if _estimate_vmem(tile_m, d_in, d_hid // c, c,
                          x_bytes, out_bytes, p_bytes) <= budget:
            return c
    return (good or cands or [1])[-1]                     # best effort


# ---------------------------------------------------------------------------
# Public wrapper
# ---------------------------------------------------------------------------

def positionwise_feed_forward(x, w1, b1, w2, b2, gamma, beta, *,
                              eps=1e-6,
                              tile_m=None,
                              hid_chunks=None,
                              param_dtype=jnp.bfloat16,
                              out_dtype=None,
                              vmem_limit_bytes=None):
    """x: (B, S, d_in); w1: (d_in, d_hid); w2: (d_hid, d_in) (pre-transposed vs
    nn.Linear.weight); b1: (d_hid,); b2/gamma/beta: (d_in,).

    tile_m / hid_chunks / vmem_limit_bytes default to None = auto-selected from
    the TPU generation (VMEM capacity, MXU width, TensorCore count).
    param_dtype: storage / MXU dtype for w1 & w2 (bf16 halves VMEM + DMA bytes).
    out_dtype: output dtype (defaults to x.dtype; pass bf16 to halve output traffic).
    """
    B, S, d_in = x.shape
    d_hid = w1.shape[1]
    M = B * S
    out_dtype = x.dtype if out_dtype is None else out_dtype

    tile_pref, tile_chunked_pref, vmem_cap, cores, lane_k = _hw_config()
    x_bytes = x.dtype.itemsize
    out_bytes = jnp.dtype(out_dtype).itemsize
    p_bytes = jnp.dtype(param_dtype).itemsize

    # --- token tiling -------------------------------------------------------
    if tile_m is None:
        tm, Mp = _choose_token_tiling(M, tile_pref, cores)
    else:
        tm = max(8, _round_up(min(int(tile_m), _round_up(M, 8)), 8))
        Mp = _round_up(M, tm)

    # --- d_hid chunking -----------------------------------------------------
    if hid_chunks is None:
        chunks = _auto_hid_chunks(d_in, d_hid, tm, x_bytes, out_bytes, p_bytes,
                                  vmem_cap, lane_k)
        # Chunked => w1/w2 are re-streamed once per token tile; a bigger token
        # tile amortizes that weight HBM traffic if it still fits the budget.
        if chunks > 1 and tile_m is None and M > tm:
            tm2, Mp2 = _choose_token_tiling(
                M, max(tile_chunked_pref, tile_pref), cores)
            chunks2 = _auto_hid_chunks(d_in, d_hid, tm2, x_bytes, out_bytes,
                                       p_bytes, vmem_cap, lane_k)
            if _estimate_vmem(tm2, d_in, d_hid // chunks2, chunks2, x_bytes,
                              out_bytes, p_bytes) <= int(vmem_cap * 0.75):
                tm, Mp, chunks = tm2, Mp2, chunks2
    else:
        chunks = int(hid_chunks)
        if d_hid % chunks != 0:
            raise ValueError("hid_chunks must divide d_hid")
        if chunks > 1 and (d_hid // chunks) % 128 != 0:
            raise ValueError("per-chunk hidden width must be a multiple of 128")
    tile_k = d_hid // chunks

    if vmem_limit_bytes is None:
        usage = _estimate_vmem(tm, d_in, tile_k, chunks, x_bytes, out_bytes, p_bytes)
        vmem_limit_bytes = int(min(vmem_cap * 0.85,
                                   max(usage + (8 << 20), 32 << 20)))

    # --- operands -----------------------------------------------------------
    x2 = x.reshape(M, d_in)
    if Mp != M:
        # TODO(synk): padded rows could be masked in-kernel to avoid this extra
        # HBM pass; only hit when the token count has no tile-aligned factor.
        x2 = jnp.pad(x2, ((0, Mp - M), (0, 0)))

    w1c = w1.astype(param_dtype)
    w2c = w2.astype(param_dtype)
    b1r = b1.reshape(1, d_hid).astype(jnp.float32)
    b2r = b2.reshape(1, d_in).astype(jnp.float32)
    gr = gamma.reshape(1, d_in).astype(jnp.float32)
    br = beta.reshape(1, d_in).astype(jnp.float32)

    nbytes = lambda a: int(a.size) * a.dtype.itemsize
    weight_passes = (Mp // tm) if chunks > 1 else 1
    cost = pl.CostEstimate(
        flops=4 * Mp * d_in * d_hid + 10 * Mp * d_in,     # two GEMMs + epilogue
        transcendentals=Mp,                               # one rsqrt per token row
        bytes_accessed=(Mp * d_in * (x_bytes + out_bytes)
                        + weight_passes * (nbytes(w1c) + nbytes(w2c))
                        + nbytes(b1r) + nbytes(b2r) + nbytes(gr) + nbytes(br)))

    if chunks == 1:
        call = pl.pallas_call(
            functools.partial(_ffn_kernel_fused, eps=eps),
            out_shape=jax.ShapeDtypeStruct((Mp, d_in), out_dtype),
            grid_spec=pltpu.PrefetchScalarGridSpec(
                num_scalar_prefetch=0,
                grid=(Mp // tm,),
                in_specs=[
                    pl.BlockSpec((tm, d_in), lambda i: (i, 0)),      # x tile
                    pl.BlockSpec((d_in, d_hid), lambda i: (0, 0)),   # w1 (resident)
                    pl.BlockSpec((1, d_hid), lambda i: (0, 0)),      # b1
                    pl.BlockSpec((d_hid, d_in), lambda i: (0, 0)),   # w2 (resident)
                    pl.BlockSpec((1, d_in), lambda i: (0, 0)),       # b2
                    pl.BlockSpec((1, d_in), lambda i: (0, 0)),       # gamma
                    pl.BlockSpec((1, d_in), lambda i: (0, 0)),       # beta
                ],
                out_specs=pl.BlockSpec((tm, d_in), lambda i: (i, 0)),
            ),
            compiler_params=pltpu.CompilerParams(
                dimension_semantics=("parallel",),
                vmem_limit_bytes=vmem_limit_bytes),
            cost_estimate=cost,
        )
    else:
        call = pl.pallas_call(
            functools.partial(_ffn_kernel_chunked, eps=eps),
            out_shape=jax.ShapeDtypeStruct((Mp, d_in), out_dtype),
            grid_spec=pltpu.PrefetchScalarGridSpec(
                num_scalar_prefetch=0,
                grid=(Mp // tm, chunks),
                in_specs=[
                    pl.BlockSpec((tm, d_in), lambda i, k: (i, 0)),      # x tile
                    pl.BlockSpec((d_in, tile_k), lambda i, k: (0, k)),  # w1 chunk
                    pl.BlockSpec((1, tile_k), lambda i, k: (0, k)),     # b1 chunk
                    pl.BlockSpec((tile_k, d_in), lambda i, k: (k, 0)),  # w2 chunk
                    pl.BlockSpec((1, d_in), lambda i, k: (0, 0)),       # b2
                    pl.BlockSpec((1, d_in), lambda i, k: (0, 0)),       # gamma
                    pl.BlockSpec((1, d_in), lambda i, k: (0, 0)),       # beta
                ],
                out_specs=pl.BlockSpec((tm, d_in), lambda i, k: (i, 0)),
                scratch_shapes=[pltpu.VMEM((tm, d_in), jnp.float32)],
            ),
            compiler_params=pltpu.CompilerParams(
                dimension_semantics=("parallel", "arbitrary"),
                vmem_limit_bytes=vmem_limit_bytes),
            cost_estimate=cost,
        )

    out = call(x2, w1c, b1r, w2c, b2r, gr, br)
    if Mp != M:
        out = out[:M]
    return out.reshape(B, S, d_in)


def _reference(x, w1, b1, w2, b2, gamma, beta, eps=1e-6,
               param_dtype=jnp.bfloat16):
    """Pure-JAX reference matching the kernel's bf16 weight/activation rounding."""
    f32 = jnp.float32
    rt = lambda a: a.astype(param_dtype).astype(f32)
    h = jnp.maximum(rt(x) @ rt(w1) + b1, 0.0)
    y = rt(h) @ rt(w2) + b2
    z = y + x
    mean = jnp.mean(z, axis=-1, keepdims=True)
    zc = z - mean
    var = jnp.mean(zc * zc, axis=-1, keepdims=True)
    return zc * jax.lax.rsqrt(var + eps) * gamma + beta


if __name__ == "__main__":
    # Small but lane-dense demo shapes (d_in multiple of 128); S=15 exercises the
    # non-8-aligned token path (single full-extent tile -> no wrapper pad/slice).
    B, S, d_in, d_hid = 2, 15, 128, 256

    key = jax.random.PRNGKey(0)
    kx, k1, k2, k3, k4 = jax.random.split(key, 5)

    x = jax.random.normal(kx, (B, S, d_in), dtype=jnp.float32)
    # Parameter shapes match nn.Linear(d_in, d_hid), nn.Linear(d_hid, d_in),
    # nn.LayerNorm(d_in, eps=1e-6); weights stored pre-transposed.
    w1 = jax.random.normal(k1, (d_in, d_hid), dtype=jnp.float32) * 0.1
    b1 = jax.random.normal(k2, (d_hid,), dtype=jnp.float32) * 0.1
    w2 = jax.random.normal(k3, (d_hid, d_in), dtype=jnp.float32) * 0.1
    b2 = jax.random.normal(k4, (d_in,), dtype=jnp.float32) * 0.1
    gamma = jnp.ones((d_in,), dtype=jnp.float32)
    beta = jnp.zeros((d_in,), dtype=jnp.float32)

    ref = _reference(x, w1, b1, w2, b2, gamma, beta)

    # (1) auto config: un-chunked fused kernel, no accumulator scratch,
    #     weights fully resident, single-pass epilogue.
    out1 = jax.block_until_ready(
        positionwise_feed_forward(x, w1, b1, w2, b2, gamma, beta))
    # (2) forced d_hid chunking: exercises the accumulator + pl.when init/finalize
    #     path used when the weight slabs exceed the per-generation VMEM budget.
    out2 = jax.block_until_ready(
        positionwise_feed_forward(x, w1, b1, w2, b2, gamma, beta, hid_chunks=2))

    for out in (out1, out2):
        assert out.shape == (B, S, d_in)
        err = float(jnp.max(jnp.abs(out - ref)))
        assert jnp.allclose(out, ref, atol=2e-3, rtol=2e-3), err

    print("KERNEL_OK")
</pallas_src>

<mosaic_0001>
module attributes {stable_mosaic.version = 11 : i64} {
  func.func @_ffn_kernel_fused(%arg0: i32, %arg1: memref<30x128xf32, #tpu.memory_space<vmem>>, %arg2: memref<128x256xbf16, #tpu.memory_space<vmem>>, %arg3: memref<1x256xf32, #tpu.memory_space<vmem>>, %arg4: memref<256x128xbf16, #tpu.memory_space<vmem>>, %arg5: memref<1x128xf32, #tpu.memory_space<vmem>>, %arg6: memref<1x128xf32, #tpu.memory_space<vmem>>, %arg7: memref<1x128xf32, #tpu.memory_space<vmem>>, %arg8: memref<30x128xf32, #tpu.memory_space<vmem>>) attributes {dimension_semantics = [#tpu.dimension_semantics<parallel>], iteration_bounds = array<i64: 1>, scalar_prefetch = 0 : i64, scratch_operands = 0 : i64, tpu.core_type = #tpu.core_type<tc>, window_params = [{transform_indices = @transform_0, window_bounds = array<i64: 30, 128>}, {pipeline_mode = #tpu.pipeline_mode<synchronous>, transform_indices = @transform_1, window_bounds = array<i64: 128, 256>}, {pipeline_mode = #tpu.pipeline_mode<synchronous>, transform_indices = @transform_2, window_bounds = array<i64: 1, 256>}, {pipeline_mode = #tpu.pipeline_mode<synchronous>, transform_indices = @transform_3, window_bounds = array<i64: 256, 128>}, {pipeline_mode = #tpu.pipeline_mode<synchronous>, transform_indices = @transform_4, window_bounds = array<i64: 1, 128>}, {pipeline_mode = #tpu.pipeline_mode<synchronous>, transform_indices = @transform_5, window_bounds = array<i64: 1, 128>}, {pipeline_mode = #tpu.pipeline_mode<synchronous>, transform_indices = @transform_6, window_bounds = array<i64: 1, 128>}, {transform_indices = @transform_7, window_bounds = array<i64: 30, 128>}]} {
    %c0 = arith.constant 0 : index
    %c0_0 = arith.constant 0 : index
    %0 = vector.load %arg1[%c0, %c0_0] : memref<30x128xf32, #tpu.memory_space<vmem>>, vector<30x128xf32>
    %1 = arith.truncf %0 : vector<30x128xf32> to vector<30x128xbf16>
    %c0_1 = arith.constant 0 : index
    %c0_2 = arith.constant 0 : index
    %2 = vector.load %arg2[%c0_1, %c0_2] : memref<128x256xbf16, #tpu.memory_space<vmem>>, vector<128x256xbf16>
    %cst = arith.constant dense<0.000000e+00> : vector<30x256xf32>
    %3 = tpu.matmul %1, %2, %cst {dimension_numbers = #tpu.dot_dimension_numbers<[1], [0], [0], [1], [0, 0, 1, 1], [], []>} : vector<30x128xbf16>, vector<128x256xbf16>, vector<30x256xf32> -> vector<30x256xf32>
    %c0_3 = arith.constant 0 : index
    %c0_4 = arith.constant 0 : index
    %4 = vector.load %arg3[%c0_3, %c0_4] : memref<1x256xf32, #tpu.memory_space<vmem>>, vector<1x256xf32>
    %5 = vector.broadcast %4 : vector<1x256xf32> to vector<30x256xf32>
    %6 = arith.addf %3, %5 : vector<30x256xf32>
    %cst_5 = arith.constant 0.000000e+00 : f32
    %7 = vector.broadcast %cst_5 : f32 to vector<30x256xf32>
    %8 = arith.maximumf %6, %7 : vector<30x256xf32>
    %9 = arith.truncf %8 : vector<30x256xf32> to vector<30x256xbf16>
    %c0_6 = arith.constant 0 : index
    %c0_7 = arith.constant 0 : index
    %10 = vector.load %arg4[%c0_6, %c0_7] : memref<256x128xbf16, #tpu.memory_space<vmem>>, vector<256x128xbf16>
    %cst_8 = arith.constant dense<0.000000e+00> : vector<30x128xf32>
    %11 = tpu.matmul %9, %10, %cst_8 {dimension_numbers = #tpu.dot_dimension_numbers<[1], [0], [0], [1], [0, 0, 1, 1], [], []>} : vector<30x256xbf16>, vector<256x128xbf16>, vector<30x128xf32> -> vector<30x128xf32>
    %c0_9 = arith.constant 0 : index
    %c0_10 = arith.constant 0 : index
    %12 = vector.load %arg5[%c0_9, %c0_10] : memref<1x128xf32, #tpu.memory_space<vmem>>, vector<1x128xf32>
    %13 = vector.broadcast %12 : vector<1x128xf32> to vector<30x128xf32>
    %14 = arith.addf %11, %13 : vector<30x128xf32>
    %15 = arith.addf %14, %0 : vector<30x128xf32>
    %cst_11 = arith.constant dense<0.000000e+00> : vector<30xf32>
    %16 = vector.multi_reduction <add>, %15, %cst_11 [1] : vector<30x128xf32> to vector<30xf32>
    %17 = vector.shape_cast %16 : vector<30xf32> to vector<30x1xf32>
    %cst_12 = arith.constant 1.280000e+02 : f32
    %18 = vector.broadcast %cst_12 : f32 to vector<30x1xf32>
    %19 = arith.divf %17, %18 : vector<30x1xf32>
    %20 = vector.broadcast %19 : vector<30x1xf32> to vector<30x128xf32>
    %21 = arith.subf %15, %20 : vector<30x128xf32>
    %22 = arith.mulf %21, %21 : vector<30x128xf32>
    %cst_13 = arith.constant dense<0.000000e+00> : vector<30xf32>
    %23 = vector.multi_reduction <add>, %22, %cst_13 [1] : vector<30x128xf32> to vector<30xf32>
    %24 = vector.shape_cast %23 : vector<30xf32> to vector<30x1xf32>
    %cst_14 = arith.constant 1.280000e+02 : f32
    %25 = vector.broadcast %cst_14 : f32 to vector<30x1xf32>
    %26 = arith.divf %24, %25 : vector<30x1xf32>
    %cst_15 = arith.constant 9.99999997E-7 : f32
    %27 = vector.broadcast %cst_15 : f32 to vector<30x1xf32>
    %28 = arith.addf %26, %27 : vector<30x1xf32>
    %29 = math.rsqrt %28 : vector<30x1xf32>
    %30 = vector.broadcast %29 : vector<30x1xf32> to vector<30x128xf32>
    %31 = arith.mulf %21, %30 : vector<30x128xf32>
    %c0_16 = arith.constant 0 : index
    %c0_17 = arith.constant 0 : index
    %32 = vector.load %arg6[%c0_16, %c0_17] : memref<1x128xf32, #tpu.memory_space<vmem>>, vector<1x128xf32>
    %33 = vector.broadcast %32 : vector<1x128xf32> to vector<30x128xf32>
    %34 = arith.mulf %31, %33 : vector<30x128xf32>
    %c0_18 = arith.constant 0 : index
    %c0_19 = arith.constant 0 : index
    %35 = vector.load %arg7[%c0_18, %c0_19] : memref<1x128xf32, #tpu.memory_space<vmem>>, vector<1x128xf32>
    %36 = vector.broadcast %35 : vector<1x128xf32> to vector<30x128xf32>
    %37 = arith.addf %34, %36 : vector<30x128xf32>
    %c0_20 = arith.constant 0 : index
    %c0_21 = arith.constant 0 : index
    %38 = vector.load %arg8[%c0_20, %c0_21] : memref<30x128xf32, #tpu.memory_space<vmem>>, vector<30x128xf32>
    tpu.vector_store %arg8[%c0_20, %c0_21], %37 {strides = array<i32>} : memref<30x128xf32, #tpu.memory_space<vmem>>, vector<30x128xf32>,
    return
  }
  func.func @transform_0(%arg0: i32) -> (i32, i32) {
    %c0_i32 = arith.constant 0 : i32
    %c0_i32_0 = arith.constant 0 : i32
    return %arg0, %c0_i32 : i32, i32
  }
  func.func @transform_1(%arg0: i32) -> (i32, i32) {
    %c0_i32 = arith.constant 0 : i32
    %c0_i32_0 = arith.constant 0 : i32
    %c0_i32_1 = arith.constant 0 : i32
    return %c0_i32, %c0_i32_0 : i32, i32
  }
  func.func @transform_2(%arg0: i32) -> (i32, i32) {
    %c0_i32 = arith.constant 0 : i32
    %c0_i32_0 = arith.constant 0 : i32
    %c0_i32_1 = arith.constant 0 : i32
    return %c0_i32, %c0_i32_0 : i32, i32
  }
  func.func @transform_3(%arg0: i32) -> (i32, i32) {
    %c0_i32 = arith.constant 0 : i32
    %c0_i32_0 = arith.constant 0 : i32
    %c0_i32_1 = arith.constant 0 : i32
    return %c0_i32, %c0_i32_0 : i32, i32
  }
  func.func @transform_4(%arg0: i32) -> (i32, i32) {
    %c0_i32 = arith.constant 0 : i32
    %c0_i32_0 = arith.constant 0 : i32
    %c0_i32_1 = arith.constant 0 : i32
    return %c0_i32, %c0_i32_0 : i32, i32
  }
  func.func @transform_5(%arg0: i32) -> (i32, i32) {
    %c0_i32 = arith.constant 0 : i32
    %c0_i32_0 = arith.constant 0 : i32
    %c0_i32_1 = arith.constant 0 : i32
    return %c0_i32, %c0_i32_0 : i32, i32
  }
  func.func @transform_6(%arg0: i32) -> (i32, i32) {
    %c0_i32 = arith.constant 0 : i32
    %c0_i32_0 = arith.constant 0 : i32
    %c0_i32_1 = arith.constant 0 : i32
    return %c0_i32, %c0_i32_0 : i32, i32
  }
  func.func @transform_7(%arg0: i32) -> (i32, i32) {
    %c0_i32 = arith.constant 0 : i32
    %c0_i32_0 = arith.constant 0 : i32
    return %arg0, %c0_i32 : i32, i32
  }
}

</mosaic_0001>

<bundles_post_ra>
// kernel: tpu_custom_call.1
= control target key start
LH: loop header
LB: loop body
LE: loop exit
PB: predicated region body
PF: predicated region fallthrough
CT: control target
= control target key end

     0   :  { %12 = vsyncpa [#allocation3], 0  ;;  %s885_s0 = inlined_call_operand.hbm [shape: f32[30,128], index: 0, kind: input, shape index: {}]   ;;  %s886_s1 = inlined_call_operand.hbm [shape: bf16[128,256], index: 1, kind: input, shape index: {}]   ;;  %s887_s2 = inlined_call_operand.vmem [shape: f32[1,256], index: 2, kind: input, shape index: {}]   ;;  %s888_s3 = inlined_call_operand.hbm [shape: bf16[256,128], index: 3, kind: input, shape index: {}]   ;;  %s889_s4 = inlined_call_operand.vmem [shape: f32[1,128], index: 4, kind: input, shape index: {}]   ;;  %s890_s5 = inlined_call_operand.vmem [shape: f32[1,128], index: 5, kind: input, shape index: {}]   ;;  %s891_s6 = inlined_call_operand.vmem [shape: f32[1,128], index: 6, kind: input, shape index: {}]   ;;  %s892_s7 = inlined_call_operand.hbm [shape: f32[30,128], index: 7, kind: output, shape index: {}]  }
   0x1   :  { %13 = vsyncpa [#allocation6], 0 }
   0x2   :  { %14 = vsyncpa [#allocation4], 0  ;;  %s742_s24 = smov [#allocation5]   ;;  %s743_s26 = smov [#allocation2]  }
   0x3   :  { %s32_s25 = sshll.u32 %s742_s24, 4  ;;  %s20_s27 = sshll.u32 %s743_s26, 4  ;;  %s33_s25 = int_to_ptr.vmem [resolvable:$true] %s32_s25  ;;  %s791_s27 = int_to_ptr.vmem [resolvable:$true] %s20_s27 }
   0x4   :  { %s648_s30 = scalar_lea.hbm %s886_s1, 2048 }
   0x5   :  { %p649_p0 = scmp.ne.s32.totalorder %s886_s1, %s648_s30  ;;  %p652_p1 = scmp.lt.u32.totalorder %s648_s30, %s886_s1 }
   0x7   :  { %p654_p2 = pnand %p652_p1, %p649_p0 }
   0x9   :  { %657 = shalt.err (!%p654_p2)
}
   0xa   :  { %s658_s12 = scalar_lea.vmem %s33_s25, 2048  ;;  %p663_p4 = scmp.lt.s32.totalorder %s33_s25, %s33_s25 }
   0xb   :  { %p659_p3 = scmp.ne.s32.totalorder %s33_s25, %s658_s12  ;;  %p664_p5 = scmp.lt.s32.totalorder %s658_s12, %s658_s12 }
   0xd   :  { %p665_p6 = por %p664_p5, %p663_p4 }
   0xf   :  { %p666_p7 = pnand %p665_p6, %p659_p3 }
  0x11   :  { %669 = shalt.err (!%p666_p7)
}
  0x12   :  { %s744_s13 = smov 128   ;;  %s745_s14 = smov 8  }
  0x13   :  { %38 = dma.hbm_to_vmem [thread:$0]  %s886_s1, 2048, %s33_s25, [#allocation6], %s744_s13, %s744_s13, %s745_s14  }
  0x14   :  { %s670_s19 = scalar_lea.hbm %s885_s0, 512 }
  0x15   :  { %p671_p8 = scmp.ne.s32.totalorder %s885_s0, %s670_s19  ;;  %p674_p9 = scmp.lt.u32.totalorder %s670_s19, %s885_s0 }
  0x17   :  { %p676_p10 = pnand %p674_p9, %p671_p8 }
  0x19   :  { %679 = shalt.err (!%p676_p10)
}
  0x1a   :  { %s680_s24 = scalar_lea.vmem %s791_s27, 512  ;;  %p685_p12 = scmp.lt.s32.totalorder %s791_s27, %s791_s27 }
  0x1b   :  { %p681_p11 = scmp.ne.s32.totalorder %s791_s27, %s680_s24  ;;  %p686_p13 = scmp.lt.s32.totalorder %s680_s24, %s680_s24 }
  0x1d   :  { %p687_p0 = por %p686_p13, %p685_p12 }
  0x1f   :  { %p688_p1 = pnand %p687_p0, %p681_p11 }
  0x21   :  { %691 = shalt.err (!%p688_p1)
}
  0x22   :  { %26 = dma.hbm_to_vmem [thread:$0]  %s885_s0, 512, %s791_s27, [#allocation3], %s744_s13, %s744_s13, %s745_s14  }
  0x23   :  { %s746_s26 = smov [#allocation7]   ;;  %s692_s8 = scalar_lea.hbm %s888_s3, 2048 }
  0x24   :  { %s46_s28 = sshll.u32 %s746_s26, 4  ;;  %p693_p2 = scmp.ne.s32.totalorder %s888_s3, %s692_s8  ;;  %s47_s28 = int_to_ptr.vmem [resolvable:$true] %s46_s28 }
  0x25   :  { %p696_p3 = scmp.lt.u32.totalorder %s692_s8, %s888_s3 }
  0x27   :  { %p698_p4 = pnand %p696_p3, %p693_p2 }
  0x29   :  { %701 = shalt.err (!%p698_p4)
}
  0x2a   :  { %s702_s15 = scalar_lea.vmem %s47_s28, 2048  ;;  %p707_p6 = scmp.lt.s32.totalorder %s47_s28, %s47_s28 }
  0x2b   :  { %p703_p5 = scmp.ne.s32.totalorder %s47_s28, %s702_s15  ;;  %p708_p7 = scmp.lt.s32.totalorder %s702_s15, %s702_s15 }
  0x2d   :  { %p709_p8 = por %p708_p7, %p707_p6 }
  0x2f   :  { %p710_p9 = pnand %p709_p8, %p703_p5 }
  0x31   :  { %713 = shalt.err (!%p710_p9)
}
  0x32   :  { %s747_s0 = smov 64   ;;  %s748_s27 = smov 4  }
  0x33   :  { %52 = dma.hbm_to_vmem [thread:$0]  %s888_s3, 2048, %s47_s28, [#allocation6], %s747_s0, %s747_s0, %s748_s27  }
  0x34   :  { %736 = dma.done.wait [#allocation3], 512  }
  0x35   :  { %737 = vsyncadd [#allocation3], 4294966784 }
  0x36   :  { %738 = dma.done.wait [#allocation6], 4096  }
  0x37   :  { %739 = vsyncadd [#allocation6], 4294963200  ;;  %v749_v0 = vmov 0   ;;  %v600_v1 = vld [vmem:[#allocation5 + $0x4] ss:$8 sps:$4 sm:$0xff]   ;;  %v628_v16 = vld [vmem:[#allocation7 + $0x50] sm:$0xff]   ;;  %v93_v39 = vlaneseq }
  0x38   :  { %215 = vmatprep.mubr.bf16.mxu0 %v749_v0  ;;  %v602_v2 = vld [vmem:[#allocation5] ss:$8 sps:$4 sm:$0xff]   ;;  %183 = vmatprep.subr.bf16.mxu0 %v600_v1  ;;  %v603_v3 = vld [vmem:[#allocation5 + $0x14] ss:$8 sps:$4 sm:$0xff]   ;;  %v605_v4 = vld [vmem:[#allocation5 + $0x10] ss:$8 sps:$4 sm:$0xff]  }
  0x39   :  { %184 = vmatpush1.bf16.msra.mxu0 %v602_v2  ;;  %v606_v5 = vld [vmem:[#allocation5 + $0x24] ss:$8 sps:$4 sm:$0xff]   ;;  %v608_v6 = vld [vmem:[#allocation5 + $0x20] ss:$8 sps:$4 sm:$0xff]   ;;  %v609_v7 = vld [vmem:[#allocation5 + $0x34] ss:$8 sps:$4 sm:$0xff]  }
  0x3a   :  { %185 = vmatprep.subr.bf16.mxu0 %v603_v3  ;;  %v611_v8 = vld [vmem:[#allocation5 + $0x30] ss:$8 sps:$4 sm:$0xff]   ;;  %v612_v9 = vld [vmem:[#allocation5 + $0x44] ss:$8 sps:$4 sm:$0xff]   ;;  %v614_v11 = vld [vmem:[#allocation5 + $0x40] ss:$8 sps:$4 sm:$0xff]  }
  0x3b   :  { %v624_v10 = vld [vmem:[#allocation7 + $0x40] sm:$0xff]   ;;  %v615_v13 = vld [vmem:[#allocation5 + $0x54] ss:$8 sps:$4 sm:$0xff]   ;;  %v626_v14 = vld [vmem:[#allocation7 + $0x48] sm:$0xff]   ;;  %v94_v40 = vshrl.u32 %v93_v39, 7  ;;  %vm442_vm0 = vcmask 1045504  }
  0x3c   :  { %v625_v12 = vld [vmem:[#allocation7] sm:$0xff]   ;;  %563 = vmatprep.subr.bf16.mxu1 %v624_v10  ;;  %v627_v15 = vld [vmem:[#allocation7 + $0x8] sm:$0xff]   ;;  %v617_v17 = vld [vmem:[#allocation5 + $0x50] ss:$8 sps:$4 sm:$0xff]  }
  0x3d   :  { %186 = vmatpush1.bf16.msra.mxu0 %v605_v4  ;;  %564 = vmatpush3.bf16.msra.mxu1 %v625_v12  ;;  %v618_v18 = vld [vmem:[#allocation5 + $0x64] ss:$8 sps:$4 sm:$0xff]   ;;  %v629_v19 = vld [vmem:[#allocation7 + $0x10] sm:$0xff]   ;;  %v630_v20 = vld [vmem:[#allocation7 + $0x58] sm:$0xff]   ;;  %v95_v41 = vsub.s32 0, %v94_v40  ;;  %v99_v43 = vsub.s32 1, %v94_v40 }
  0x3e   :  { %187 = vmatprep.subr.bf16.mxu0 %v606_v5  ;;  %565 = vmatprep.subr.bf16.mxu1 %v626_v14  ;;  %v620_v21 = vld [vmem:[#allocation5 + $0x60] ss:$8 sps:$4 sm:$0xff]   ;;  %v621_v22 = vld [vmem:[#allocation5 + $0x74] ss:$8 sps:$4 sm:$0xff]   ;;  %v623_v25 = vld [vmem:[#allocation5 + $0x70] ss:$8 sps:$4 sm:$0xff]  }
  0x3f   :  { %v631_v23 = vld [vmem:[#allocation7 + $0x18] sm:$0xff]   ;;  %v632_v24 = vld [vmem:[#allocation7 + $0x60] sm:$0xff]   ;;  %v842_v27 = vld [vmem:[#allocation2 + $0x8] sm:$0xff] }
  0x40   :  { %v840_v26 = vld [vmem:[#allocation2] sm:$0xff]  ;;  %v634_v29 = vld [vmem:[#allocation7 + $0x68] sm:$0xff]   ;;  %v846_v31 = vld [vmem:[#allocation2 + $0x10] sm:$0xff] }
  0x41   :  { %188 = vmatpush1.bf16.msra.mxu0 %v608_v6  ;;  %566 = vmatpush3.bf16.msra.mxu1 %v627_v15  ;;  %v633_v28 = vld [vmem:[#allocation7 + $0x20] sm:$0xff]   ;;  %v73_v30 = vpack.c.bf16 %v842_v27, %v840_v26  ;;  %v848_v32 = vld [vmem:[#allocation2 + $0x18] sm:$0x3f]  ;;  %v635_v34 = vld [vmem:[#allocation7 + $0x28] sm:$0xff]  }
  0x42   :  { %189 = vmatprep.subr.bf16.mxu0 %v609_v7  ;;  %567 = vmatprep.subr.bf16.mxu1 %v628_v16  ;;  %v74_v33 = vpack.c.bf16 %v848_v32, %v846_v31  ;;  %v636_v35 = vld [vmem:[#allocation7 + $0x70] sm:$0xff]   ;;  %v638_v37 = vld [vmem:[#allocation7 + $0x78] sm:$0xff]   ;;  %v91_v42 = vld [vmem:[%s887_s2] sm:$0x3] }
  0x43   :  { %v637_v36 = vld [vmem:[#allocation7 + $0x30] sm:$0xff]   ;;  %v639_v38 = vld [vmem:[#allocation7 + $0x38] sm:$0xff]   ;;  %v96_v44 = vrot.slane %v91_v42, %v95_v41  ;;  %v100_v45 = vrot.slane %v91_v42, %v99_v43  ;;  %v544_v16 = vld [vmem:[%s889_s4] ss:$0 sm:$0xff] }
  0x45   :  { %190 = vmatpush1.bf16.msra.mxu0 %v611_v8  ;;  %568 = vmatpush3.bf16.msra.mxu1 %v629_v19 }
  0x46   :  { %191 = vmatprep.subr.bf16.mxu0 %v612_v9  ;;  %569 = vmatprep.subr.bf16.mxu1 %v630_v20 }
  0x49   :  { %192 = vmatpush1.bf16.msra.mxu0 %v614_v11  ;;  %570 = vmatpush3.bf16.msra.mxu1 %v631_v23 }
  0x4a   :  { %193 = vmatprep.subr.bf16.mxu0 %v615_v13  ;;  %571 = vmatprep.subr.bf16.mxu1 %v632_v24 }
  0x4d   :  { %194 = vmatpush1.bf16.msra.mxu0 %v617_v17  ;;  %572 = vmatpush3.bf16.msra.mxu1 %v633_v28 }
  0x4e   :  { %195 = vmatprep.subr.bf16.mxu0 %v618_v18  ;;  %573 = vmatprep.subr.bf16.mxu1 %v634_v29 }
  0x51   :  { %196 = vmatpush1.bf16.msra.mxu0 %v620_v21  ;;  %574 = vmatpush3.bf16.msra.mxu1 %v635_v34 }
  0x52   :  { %197 = vmatprep.subr.bf16.mxu0 %v621_v22  ;;  %575 = vmatprep.subr.bf16.mxu1 %v636_v35 }
  0x55   :  { %198 = vmatpush1.bf16.msra.mxu0 %v623_v25  ;;  %576 = vmatpush3.bf16.msra.mxu1 %v637_v36 }
  0x56   :  { %577 = vmatprep.subr.bf16.mxu1 %v638_v37 }
  0x58   :  { %216 = vmatmul.mubr.bf16.vlgmr.msra.gmra.mrb[0].mxu0 %v73_v30 }
  0x59   :  { %225 = vmatprep.mubr.bf16.mxu0 %v749_v0  ;;  %578 = vmatpush3.bf16.msra.mxu1 %v639_v38 }
  0x60   :  { %226 = vmatmul.mubr.bf16.gmra.mrb[4].mxu0 %v74_v33 }
 0x12b   :  { %v217_v46 = vpop.f32.mrb[0].mxu0 }
 0x12c   :  { %v218_v47 = vadd.f32 %v217_v46, %v96_v44  ;;  %v219_v48 = vpop.f32.mrb[1].mxu0 }
 0x12d   :  { %v220_v49 = vadd.f32 %v219_v48, %v100_v45  ;;  %v221_v50 = vpop.f32.mrb[2].mxu0 }
 0x12e   :  { %v222_v51 = vadd.f32 %v221_v50, %v96_v44  ;;  %v223_v52 = vpop.f32.mrb[3].mxu0  ;;  %v236_v54 = vmax.f32 %v218_v47, 0.0 }
 0x12f   :  { %v224_v53 = vadd.f32 %v223_v52, %v100_v45  ;;  %v237_v56 = vmax.f32 %v220_v49, 0.0 }
 0x130   :  { %v238_v55 = vmax.f32 %v222_v51, 0.0 }
 0x131   :  { %v239_v57 = vmax.f32 %v224_v53, 0.0 }
 0x132   :  { %v244_v58 = vpack.c.bf16 %v238_v55, %v236_v54 }
 0x133   :  { %v227_v59 = vpop.f32.mrb[4].mxu0  ;;  %v245_v60 = vpack.c.bf16 %v239_v57, %v237_v56 }
 0x134   :  { %v228_v61 = vadd.f32 %v227_v59, %v96_v44  ;;  %v229_v62 = vpop.f32.mrb[5].mxu0 }
 0x135   :  { %v230_v63 = vadd.f32 %v229_v62, %v100_v45  ;;  %v231_v0 = vpop.f32.mrb[6].mxu0  ;;  %415 = vmatprep.mubr.bf16.mxu1 %v245_v60  ;;  %v562_v62 = vld [vmem:[%s891_s6] ss:$0 sm:$0xff] }
 0x136   :  { %v232_v1 = vadd.f32 %v231_v0, %v96_v44  ;;  %v233_v2 = vpop.f32.mrb[7].mxu0  ;;  %416 = vmatmul.mubr.bf16.vlgmr.msra.gmra.mrb[0].mxu1 %v244_v58  ;;  %v240_v4 = vmax.f32 %v228_v61, 0.0  ;;  %v561_v58 = vld [vmem:[%s890_s5] ss:$0 sm:$0xff]  ;;  %s750_s5 = smov [#allocation8]  }
 0x137   :  { %v234_v3 = vadd.f32 %v233_v2, %v100_v45  ;;  %v241_v6 = vmax.f32 %v230_v63, 0.0  ;;  %s515_s6 = sshll.u32 %s750_s5, 4  ;;  %s516_s6 = int_to_ptr.vmem [resolvable:$true] %s515_s6 }
 0x138   :  { %v242_v5 = vmax.f32 %v232_v1, 0.0  ;;  %s714_s23 = scalar_lea.vmem %s516_s6, 512  ;;  %p719_p11 = scmp.lt.s32.totalorder %s516_s6, %s516_s6 }
 0x139   :  { %v243_v7 = vmax.f32 %v234_v3, 0.0  ;;  %p715_p10 = scmp.ne.s32.totalorder %s516_s6, %s714_s23  ;;  %p720_p12 = scmp.lt.s32.totalorder %s714_s23, %s714_s23 }
 0x13a   :  { %v246_v8 = vpack.c.bf16 %v242_v5, %v240_v4 }
 0x13b   :  { %v247_v9 = vpack.c.bf16 %v243_v7, %v241_v6  ;;  %p721_p13 = por %p720_p12, %p719_p11 }
 0x13d   :  { %423 = vmatprep.mubr.bf16.mxu1 %v247_v9  ;;  %p722_p0 = pnand %p721_p13, %p715_p10 }
 0x13e   :  { %424 = vmatmul.mubr.bf16.gmra.mrb[4].mxu1 %v246_v8 }
 0x209   :  { %v579_v10 = vpop.f32.mrb[0].mxu1 }
 0x20a   :  { %v580_v11 = vpop.f32.mrb[1].mxu1 }
 0x20b   :  { %v581_v12 = vadd.f32 %v580_v11, %v579_v10  ;;  %v582_v13 = vpop.f32.mrb[2].mxu1 }
 0x20c   :  { %v583_v14 = vpop.f32.mrb[3].mxu1 }
 0x20d   :  { %v584_v15 = vadd.f32 %v583_v14, %v582_v13  ;;  %v418_v33 = vadd.f32 %v581_v12, %v544_v16 }
 0x20f   :  { %v421_v17 = vadd.f32 %v584_v15, %v544_v16 }
 0x211   :  { %v585_v18 = vpop.f32.mrb[4].mxu1  ;;  %v433_v19 = vadd.f32 %v421_v17, %v842_v27  ;;  %v432_v27 = vadd.f32 %v418_v33, %v840_v26 }
 0x212   :  { %v586_v20 = vpop.f32.mrb[5].mxu1 }
 0x213   :  { %v587_v21 = vadd.f32 %v586_v20, %v585_v18  ;;  %v588_v22 = vpop.f32.mrb[6].mxu1  ;;  %438 = vadd.xlane.f32.xlu1 %v433_v19 }
 0x214   :  { %v589_v23 = vpop.f32.mrb[7].mxu1 }
 0x215   :  { %v426_v24 = vadd.f32 %v587_v21, %v544_v16  ;;  %v590_v25 = vadd.f32 %v589_v23, %v588_v22 }
 0x217   :  { %v429_v28 = vadd.f32 %v590_v25, %v544_v16  ;;  %v434_v29 = vadd.f32 %v426_v24, %v846_v31 }
 0x219   :  { %440 = vadd.xlane.f32.xlu1 %v434_v29  ;;  %v435_v30 = vadd.f32 %v429_v28, %v848_v32 }
 0x21b   :  { %v443_v34 = vsel %vm442_vm0, %v435_v30, 0.0 }
 0x21c   :  { %444 = vadd.xlane.f32.xlu0 %v443_v34 }
 0x220   :  { %436 = vadd.xlane.f32.xlu0 %v432_v27 }
 0x2a0   :  { %v439_v35 = vpop.xlane.xlu1 %438 }
 0x2a1   :  { %v448_v36 = vmul.f32 0.0078125, %v439_v35 }
 0x2a3   :  { %v452_v37 = vsub.f32 %v433_v19, %v448_v36 }
 0x2a5   :  { %v456_v38 = vmul.f32 %v452_v37, %v452_v37 }
 0x2a6   :  { %v441_v41 = vpop.xlane.xlu1 %440 }
 0x2a7   :  { %461 = vadd.xlane.f32.xlu1 %v456_v38  ;;  %v449_v43 = vmul.f32 0.0078125, %v441_v41 }
 0x2a9   :  { %v445_v39 = vpop.xlane.xlu0 %444  ;;  %v453_v47 = vsub.f32 %v434_v29, %v449_v43 }
 0x2aa   :  { %v450_v40 = vmul.f32 0.0078125, %v445_v39 }
 0x2ab   :  { %v457_v48 = vmul.f32 %v453_v47, %v453_v47 }
 0x2ac   :  { %v454_v31 = vsub.f32 %v435_v30, %v450_v40 }
 0x2ad   :  { %v437_v42 = vpop.xlane.xlu0 %436 }
 0x2ae   :  { %v447_v44 = vmul.f32 0.0078125, %v437_v42  ;;  %v458_v32 = vmul.f32 %v454_v31, %v454_v31 }
 0x2b0   :  { %v451_v45 = vsub.f32 %v432_v27, %v447_v44  ;;  %v465_v46 = vsel %vm442_vm0, %v458_v32, 0.0 }
 0x2b1   :  { %466 = vadd.xlane.f32.xlu1 %v465_v46 }
 0x2b2   :  { %v455_v26 = vmul.f32 %v451_v45, %v451_v45 }
 0x2b4   :  { %459 = vadd.xlane.f32.xlu0 %v455_v26 }
 0x2b8   :  { %463 = vadd.xlane.f32.xlu0 %v457_v48 }
 0x334   :  { %v462_v49 = vpop.xlane.xlu1 %461 }
 0x335   :  { %v469_v50 = vmul.f32 0.0078125, %v462_v49 }
 0x337   :  { %v473_v51 = vadd.f32 1e-06, %v469_v50 }
 0x339   :  { %640 = vrsqrt.f32 %v473_v51 }
 0x33e   :  { %v467_v52 = vpop.xlane.xlu1 %466 }
 0x33f   :  { %v471_v53 = vmul.f32 0.0078125, %v467_v52 }
 0x341   :  { %v475_v54 = vadd.f32 1e-06, %v471_v53  ;;  %v460_v55 = vpop.xlane.xlu0 %459 }
 0x342   :  { %v468_v56 = vmul.f32 0.0078125, %v460_v55 }
 0x343   :  { %v641_v57 = vpop.eup %640  ;;  %642 = vrsqrt.f32 %v475_v54 }
 0x344   :  { %v481_v59 = vmul.f32 %v641_v57, %v452_v37  ;;  %v472_v60 = vadd.f32 1e-06, %v468_v56 }
 0x345   :  { %v464_v61 = vpop.xlane.xlu0 %463 }
 0x346   :  { %644 = vrsqrt.f32 %v472_v60  ;;  %v470_v63 = vmul.f32 0.0078125, %v464_v61  ;;  %v492_v0 = vmul.f32 %v561_v58, %v481_v59 }
 0x348   :  { %v474_v1 = vadd.f32 1e-06, %v470_v63  ;;  %v503_v2 = vadd.f32 %v562_v62, %v492_v0 }
 0x34a   :  { %646 = vrsqrt.f32 %v474_v1  ;;  %507 = vst [vmem:[#allocation8 + $0x8] sm:$0xff] %v503_v2 }
 0x34d   :  { %v643_v3 = vpop.eup %642 }
 0x34e   :  { %v483_v4 = vmul.f32 %v643_v3, %v454_v31 }
 0x350   :  { %v645_v5 = vpop.eup %644  ;;  %v494_v6 = vmul.f32 %v561_v58, %v483_v4 }
 0x351   :  { %v480_v7 = vmul.f32 %v645_v5, %v451_v45 }
 0x352   :  { %v505_v8 = vadd.f32 %v562_v62, %v494_v6 }
 0x353   :  { %v491_v9 = vmul.f32 %v561_v58, %v480_v7 }
 0x354   :  { %v647_v10 = vpop.eup %646  ;;  %509 = vst [vmem:[#allocation8 + $0x18] sm:$0x3f] %v505_v8 }
 0x355   :  { %v482_v11 = vmul.f32 %v647_v10, %v453_v47  ;;  %v502_v12 = vadd.f32 %v562_v62, %v491_v9 }
 0x357   :  { %v493_v13 = vmul.f32 %v561_v58, %v482_v11  ;;  %506 = vst [vmem:[#allocation8] sm:$0xff] %v502_v12 }
 0x359   :  { %v504_v14 = vadd.f32 %v562_v62, %v493_v13 }
 0x35b   :  { %508 = vst [vmem:[#allocation8 + $0x10] sm:$0xff] %v504_v14 }
 0x35c   :  { %725 = shalt.err (!%p722_p0)
}
 0x35d   :  { %s726_s25 = scalar_lea.hbm %s892_s7, 512 }
 0x35e   :  { %p727_p1 = scmp.ne.s32.totalorder %s892_s7, %s726_s25  ;;  %p730_p2 = scmp.lt.u32.totalorder %s726_s25, %s892_s7 }
 0x360   :  { %p732_p3 = pnand %p730_p2, %p727_p1 }
 0x362   :  { %735 = shalt.err (!%p732_p3)
}
 0x363   :  { %521 = dma.vmem_to_hbm [thread:$0]  %s516_s6, 512, %s892_s7, [#allocation4], %s744_s13, %s744_s13, %s745_s14  }
 0x364   :  { %740 = dma.done.wait [#allocation4], 512  }
 0x365   :  { %741 = vsyncadd [#allocation4], 4294966784 }
 0x366   :  { %525 = vsyncpa [#allocation3], 1 }
 0x367   :  { %526 = vsyncpa [#allocation6], 1 }
 0x368   :  { %527 = vsyncpa [#allocation4], 1 }

</bundles_post_ra>
